<compile_context>
chip_gen: v7x
topology: tpu7x:2x2x1
jax: 0.10.0
libtpu: 0.0.40
codegen_flags: <defaults>
</compile_context>

<pallas_src>
import numpy as np
import jax
import jax.numpy as jnp
from jax.experimental import pallas as pl
from jax.experimental.pallas import tpu as pltpu


def _time_embed_kernel(t_ref, consts_ref, dw_ref, out_ref):
    """Fused GaussianFourierProjection -> Linear -> SiLU for one batch tile.

    t_ref      : (TM, 1) f32    time steps (column)
    consts_ref : (8, E)  f32    row 0: 2*pi*[W, W]; row 1: phase [0..0, pi/2..];
                                row 2: Linear bias; rows 3..7: padding
    dw_ref     : (E, E)  bf16   Linear weight, pre-transposed to (in, out)
    out_ref    : (TM, E) f32    swish(Linear(fourier_features(t)))
    """
    w_ext = consts_ref[0:1, :]          # (1, E)
    phase = consts_ref[1:2, :]          # (1, E)
    bias = consts_ref[2:3, :]           # (1, E)

    # Fourier features with a single full-width (lane-dense) sin:
    #   lanes [0, H)  : sin(2*pi*t*W + 0)     == sin part
    #   lanes [H, 2H) : sin(2*pi*t*W + pi/2)  == cos part
    feats = jnp.sin(t_ref[...] * w_ext + phase)                     # (TM, E) f32

    # Time-embedding dense layer: bf16 operands, f32 accumulation on the MXU.
    y = jnp.dot(feats.astype(jnp.bfloat16), dw_ref[...],
                preferred_element_type=jnp.float32)
    y = y + bias

    # swish / SiLU: x * sigmoid(x).  exp -> EUP; approx reciprocal -> EUP too,
    # keeping the Newton-refinement divide off the VALU.
    sig = pl.reciprocal(1.0 + jnp.exp(-y), approx=True)
    out_ref[...] = y * sig


def init_time_embed_params(key, embed_dim, scale=30.0):
    """Init-time constants: frozen GFP weights (2*pi folded in) + Linear."""
    half = embed_dim // 2
    k_w, k_dw, k_db = jax.random.split(key, 3)

    # Frozen GFP weights (requires_grad=False in torch).
    W = jax.random.normal(k_w, (half,), dtype=jnp.float32) * scale

    # Pack the three per-lane constants into a single (8, E) block:
    #   row 0: 2*pi * concat([W, W])
    #   row 1: phase offset turning lanes [H, 2H) into cos
    #   row 2: Linear bias
    w_ext = (2.0 * np.pi) * jnp.concatenate([W, W])
    phase = jnp.concatenate([
        jnp.zeros((half,), jnp.float32),
        jnp.full((half,), np.pi / 2.0, dtype=jnp.float32),
    ])
    dense_b = jax.random.normal(k_db, (embed_dim,), jnp.float32) * 0.1
    consts = jnp.zeros((8, embed_dim), jnp.float32)
    consts = consts.at[0].set(w_ext).at[1].set(phase).at[2].set(dense_b)

    # nn.Linear(embed_dim, embed_dim); weight stored pre-transposed (in, out),
    # quantized to bf16 once at init (MXU-native on v5e/v6e/v7x).
    dense_w = (jax.random.normal(k_dw, (embed_dim, embed_dim), jnp.float32)
               / np.sqrt(embed_dim)).astype(jnp.bfloat16)

    return {"W": W, "consts": consts, "dense_w": dense_w, "dense_b": dense_b}


def time_embedding(t, params, *, tm_max=1024):
    """embed = swish(Linear(GaussianFourierProjection(t))), the ScoreNet t-path.

    t: (B,) f32 time steps -> (B, embed_dim) f32.
    """
    B = t.shape[0]
    E = params["consts"].shape[1]

    # Batch tile: multiple of 8 sublanes.  When there are >= 16 padded rows,
    # force >= 2 grid steps so v7x's second TensorCore gets work ("parallel"
    # axis is sharded across TCs); cap at tm_max to amortize per-step overhead.
    b_pad8 = ((B + 7) // 8) * 8
    if b_pad8 >= 16:
        tm = min(tm_max, ((b_pad8 // 2 + 7) // 8) * 8)
    else:
        tm = b_pad8
    steps = pl.cdiv(b_pad8, tm)
    b_pad = steps * tm

    t2 = t.astype(jnp.float32)[:, None]                    # (B, 1)
    if b_pad != B:
        t2 = jnp.pad(t2, ((0, b_pad - B), (0, 0)))         # single cheap pad

    cost = pl.CostEstimate(
        flops=2 * b_pad * E * E + 6 * b_pad * E,
        transcendentals=2 * b_pad * E,                     # sin + sigmoid exp
        bytes_accessed=4 * b_pad + 4 * 8 * E + 2 * E * E + 4 * b_pad * E,
    )

    out = pl.pallas_call(
        _time_embed_kernel,
        out_shape=jax.ShapeDtypeStruct((b_pad, E), jnp.float32),
        grid=(steps,),
        in_specs=[
            pl.BlockSpec((tm, 1), lambda i: (i, 0)),       # t tile
            pl.BlockSpec((8, E), lambda i: (0, 0)),        # packed constants
            pl.BlockSpec((E, E), lambda i: (0, 0)),        # bf16 Linear weight
        ],
        out_specs=pl.BlockSpec((tm, E), lambda i: (i, 0)),
        compiler_params=pltpu.CompilerParams(
            dimension_semantics=("parallel",)),
        cost_estimate=cost,
    )(t2, params["consts"], params["dense_w"])

    if b_pad != B:
        out = out[:B]
    return out


def _reference(t, params):
    """Pure-JAX reference with the exact PyTorch module semantics."""
    W = params["W"]
    x_proj = t[:, None] * W[None, :] * (2.0 * np.pi)
    feats = jnp.concatenate([jnp.sin(x_proj), jnp.cos(x_proj)], axis=-1)
    y = feats @ params["dense_w"].astype(jnp.float32) + params["dense_b"][None, :]
    return y * (1.0 / (1.0 + jnp.exp(-y)))


if __name__ == "__main__":
    key = jax.random.PRNGKey(0)
    k_params, k_t1, k_t2 = jax.random.split(key, 3)

    embed_dim = 256       # ScoreNet default embed_dim
    scale = 30.0
    params = init_time_embed_params(k_params, embed_dim, scale=scale)

    # Case 1: B multiple of 8 -> no pad, no slice, single grid step.
    t_a = jax.random.uniform(k_t1, (8,), dtype=jnp.float32)
    out_a = jax.block_until_ready(time_embedding(t_a, params))
    np.testing.assert_allclose(np.asarray(out_a), np.asarray(_reference(t_a, params)),
                               rtol=2e-2, atol=2e-2)
    assert out_a.shape == (8, embed_dim)

    # Case 2: ragged B -> pad path + 2-step grid (both TCs on v7x).
    t_b = jax.random.uniform(k_t2, (21,), dtype=jnp.float32)
    out_b = jax.block_until_ready(time_embedding(t_b, params))
    np.testing.assert_allclose(np.asarray(out_b), np.asarray(_reference(t_b, params)),
                               rtol=2e-2, atol=2e-2)
    assert out_b.shape == (21, embed_dim)

    print("KERNEL_OK")
</pallas_src>

<mosaic_0001>
module attributes {stable_mosaic.version = 11 : i64} {
  func.func @_time_embed_kernel(%arg0: i32, %arg1: memref<8x1xf32, #tpu.memory_space<vmem>>, %arg2: memref<8x256xf32, #tpu.memory_space<vmem>>, %arg3: memref<256x256xbf16, #tpu.memory_space<vmem>>, %arg4: memref<8x256xf32, #tpu.memory_space<vmem>>) attributes {dimension_semantics = [#tpu.dimension_semantics<parallel>], iteration_bounds = array<i64: 1>, scalar_prefetch = 0 : i64, scratch_operands = 0 : i64, tpu.core_type = #tpu.core_type<tc>, window_params = [{transform_indices = @transform_0, window_bounds = array<i64: 8, 1>}, {pipeline_mode = #tpu.pipeline_mode<synchronous>, transform_indices = @transform_1, window_bounds = array<i64: 8, 256>}, {pipeline_mode = #tpu.pipeline_mode<synchronous>, transform_indices = @transform_2, window_bounds = array<i64: 256, 256>}, {transform_indices = @transform_3, window_bounds = array<i64: 8, 256>}]} {
    %c0 = arith.constant 0 : index
    %c0_0 = arith.constant 0 : index
    %0 = vector.load %arg2[%c0, %c0_0] : memref<8x256xf32, #tpu.memory_space<vmem>>, vector<1x256xf32>
    %c1 = arith.constant 1 : index
    %c0_1 = arith.constant 0 : index
    %1 = vector.load %arg2[%c1, %c0_1] : memref<8x256xf32, #tpu.memory_space<vmem>>, vector<1x256xf32>
    %c2 = arith.constant 2 : index
    %c0_2 = arith.constant 0 : index
    %2 = vector.load %arg2[%c2, %c0_2] : memref<8x256xf32, #tpu.memory_space<vmem>>, vector<1x256xf32>
    %c0_3 = arith.constant 0 : index
    %c0_4 = arith.constant 0 : index
    %3 = vector.load %arg1[%c0_3, %c0_4] : memref<8x1xf32, #tpu.memory_space<vmem>>, vector<8x1xf32>
    %4 = vector.broadcast %3 : vector<8x1xf32> to vector<8x256xf32>
    %5 = vector.broadcast %0 : vector<1x256xf32> to vector<8x256xf32>
    %6 = arith.mulf %4, %5 : vector<8x256xf32>
    %7 = vector.broadcast %1 : vector<1x256xf32> to vector<8x256xf32>
    %8 = arith.addf %6, %7 : vector<8x256xf32>
    %9 = math.sin %8 : vector<8x256xf32>
    %10 = arith.truncf %9 : vector<8x256xf32> to vector<8x256xbf16>
    %c0_5 = arith.constant 0 : index
    %c0_6 = arith.constant 0 : index
    %11 = vector.load %arg3[%c0_5, %c0_6] : memref<256x256xbf16, #tpu.memory_space<vmem>>, vector<256x256xbf16>
    %cst = arith.constant dense<0.000000e+00> : vector<8x256xf32>
    %12 = tpu.matmul %10, %11, %cst {dimension_numbers = #tpu.dot_dimension_numbers<[1], [0], [0], [1], [0, 0, 1, 1], [], []>} : vector<8x256xbf16>, vector<256x256xbf16>, vector<8x256xf32> -> vector<8x256xf32>
    %13 = vector.broadcast %2 : vector<1x256xf32> to vector<8x256xf32>
    %14 = arith.addf %12, %13 : vector<8x256xf32>
    %cst_7 = arith.constant 0.000000e+00 : f32
    %15 = vector.broadcast %cst_7 : f32 to vector<8x256xf32>
    %16 = arith.subf %15, %14 : vector<8x256xf32>
    %17 = math.exp %16 : vector<8x256xf32>
    %cst_8 = arith.constant 1.000000e+00 : f32
    %18 = vector.broadcast %cst_8 : f32 to vector<8x256xf32>
    %19 = arith.addf %18, %17 : vector<8x256xf32>
    %20 = tpu.reciprocal %19 {approx = true} : vector<8x256xf32> -> vector<8x256xf32>
    %21 = arith.mulf %14, %20 : vector<8x256xf32>
    %c0_9 = arith.constant 0 : index
    %c0_10 = arith.constant 0 : index
    %22 = vector.load %arg4[%c0_9, %c0_10] : memref<8x256xf32, #tpu.memory_space<vmem>>, vector<8x256xf32>
    tpu.vector_store %arg4[%c0_9, %c0_10], %21 {strides = array<i32>} : memref<8x256xf32, #tpu.memory_space<vmem>>, vector<8x256xf32>,
    return
  }
  func.func @transform_0(%arg0: i32) -> (i32, i32) {
    %c0_i32 = arith.constant 0 : i32
    %c0_i32_0 = arith.constant 0 : i32
    return %arg0, %c0_i32 : i32, i32
  }
  func.func @transform_1(%arg0: i32) -> (i32, i32) {
    %c0_i32 = arith.constant 0 : i32
    %c0_i32_0 = arith.constant 0 : i32
    %c0_i32_1 = arith.constant 0 : i32
    return %c0_i32, %c0_i32_0 : i32, i32
  }
  func.func @transform_2(%arg0: i32) -> (i32, i32) {
    %c0_i32 = arith.constant 0 : i32
    %c0_i32_0 = arith.constant 0 : i32
    %c0_i32_1 = arith.constant 0 : i32
    return %c0_i32, %c0_i32_0 : i32, i32
  }
  func.func @transform_3(%arg0: i32) -> (i32, i32) {
    %c0_i32 = arith.constant 0 : i32
    %c0_i32_0 = arith.constant 0 : i32
    return %arg0, %c0_i32 : i32, i32
  }
}

</mosaic_0001>

<bundles_post_ra>
// kernel: tpu_custom_call.1
= control target key start
LH: loop header
LB: loop body
LE: loop exit
PB: predicated region body
PF: predicated region fallthrough
CT: control target
= control target key end

     0   :  { %8 = vsyncpa [#allocation3], 0  ;;  %s917_s0 = inlined_call_operand.vmem [shape: f32[8,1], index: 0, kind: input, shape index: {}]   ;;  %s918_s1 = inlined_call_operand.hbm [shape: f32[8,256], index: 1, kind: input, shape index: {}]   ;;  %s919_s2 = inlined_call_operand.hbm [shape: bf16[256,256], index: 2, kind: input, shape index: {}]   ;;  %s920_s3 = inlined_call_operand.hbm [shape: f32[8,256], index: 3, kind: output, shape index: {}]  }
   0x1   :  { %9 = vsyncpa [#allocation6], 0 }
   0x2   :  { %10 = vsyncpa [#allocation4], 0  ;;  %s759_s12 = smov [#allocation2]   ;;  %s760_s14 = smov [#allocation5]  }
   0x3   :  { %s19_s13 = sshll.u32 %s759_s12, 4  ;;  %s28_s15 = sshll.u32 %s760_s14, 4  ;;  %s20_s13 = int_to_ptr.vmem [resolvable:$true] %s19_s13  ;;  %s791_s15 = int_to_ptr.vmem [resolvable:$true] %s28_s15 }
   0x4   :  { %s687_s18 = scalar_lea.hbm %s918_s1, 256 }
   0x5   :  { %p688_p0 = scmp.ne.s32.totalorder %s918_s1, %s687_s18  ;;  %p691_p1 = scmp.lt.u32.totalorder %s687_s18, %s918_s1 }
   0x7   :  { %p693_p2 = pnand %p691_p1, %p688_p0 }
   0x9   :  { %696 = shalt.err (!%p693_p2)
}
   0xa   :  { %s697_s23 = scalar_lea.vmem %s20_s13, 256  ;;  %p702_p4 = scmp.lt.s32.totalorder %s20_s13, %s20_s13 }
   0xb   :  { %p698_p3 = scmp.ne.s32.totalorder %s20_s13, %s697_s23  ;;  %p703_p5 = scmp.lt.s32.totalorder %s697_s23, %s697_s23 }
   0xd   :  { %p704_p6 = por %p703_p5, %p702_p4 }
   0xf   :  { %p705_p7 = pnand %p704_p6, %p698_p3 }
  0x11   :  { %708 = shalt.err (!%p705_p7)
}
  0x12   :  { %22 = dma.hbm_to_vmem [thread:$0]  %s918_s1, 256, %s20_s13, [#allocation3]  }
  0x13   :  { %s709_s28 = scalar_lea.hbm %s919_s2, 4096 }
  0x14   :  { %p710_p8 = scmp.ne.s32.totalorder %s919_s2, %s709_s28  ;;  %p713_p9 = scmp.lt.u32.totalorder %s709_s28, %s919_s2 }
  0x16   :  { %p715_p10 = pnand %p713_p9, %p710_p8 }
  0x18   :  { %718 = shalt.err (!%p715_p10)
}
  0x19   :  { %s719_s6 = scalar_lea.vmem %s791_s15, 4096  ;;  %p724_p12 = scmp.lt.s32.totalorder %s791_s15, %s791_s15 }
  0x1a   :  { %p720_p11 = scmp.ne.s32.totalorder %s791_s15, %s719_s6  ;;  %p725_p13 = scmp.lt.s32.totalorder %s719_s6, %s719_s6 }
  0x1c   :  { %p726_p0 = por %p725_p13, %p724_p12 }
  0x1e   :  { %p727_p1 = pnand %p726_p0, %p720_p11 }
  0x20   :  { %730 = shalt.err (!%p727_p1)
}
  0x21   :  { %s761_s1 = smov 128   ;;  %s762_s7 = smov 8  }
  0x22   :  { %34 = dma.hbm_to_vmem [thread:$0]  %s919_s2, 4096, %s791_s15, [#allocation6], %s761_s1, %s761_s1, %s762_s7  }
  0x23   :  { %753 = dma.done.wait [#allocation3], 256  }
  0x24   :  { %754 = vsyncadd [#allocation3], 4294967040 }
  0x25   :  { %755 = dma.done.wait [#allocation6], 4096  }
  0x26   :  { %756 = vsyncadd [#allocation6], 4294963200  ;;  %v763_v0 = vmov 0   ;;  %v46_v1 = vld [vmem:[%s917_s0] sm:$0xff]  ;;  %v626_v4 = vld [vmem:[#allocation5 + $0x14] ss:$8 sps:$4 sm:$0xff]   ;;  %v53_v34 = vlaneseq }
  0x27   :  { %622 = vset.pattern.permute.xlu0 %v763_v0  ;;  %v623_v2 = vld [vmem:[#allocation5 + $0x4] ss:$8 sps:$4 sm:$0xff]   ;;  %v625_v3 = vld [vmem:[#allocation5] ss:$8 sps:$4 sm:$0xff]   ;;  %v628_v5 = vld [vmem:[#allocation5 + $0x10] ss:$8 sps:$4 sm:$0xff]  }
  0x28   :  { %49 = vperm.xlu0 %622, %v46_v1   ;;  %491 = vmatprep.subr.bf16.mxu0 %v623_v2  ;;  %v629_v6 = vld [vmem:[#allocation5 + $0x24] ss:$8 sps:$4 sm:$0xff]   ;;  %v631_v7 = vld [vmem:[#allocation5 + $0x20] ss:$8 sps:$4 sm:$0xff]   ;;  %v632_v8 = vld [vmem:[#allocation5 + $0x34] ss:$8 sps:$4 sm:$0xff]  }
  0x29   :  { %492 = vmatpush1.bf16.msra.mxu0 %v625_v3  ;;  %v634_v9 = vld [vmem:[#allocation5 + $0x30] ss:$8 sps:$4 sm:$0xff]   ;;  %v635_v10 = vld [vmem:[#allocation5 + $0x44] ss:$8 sps:$4 sm:$0xff]   ;;  %v637_v11 = vld [vmem:[#allocation5 + $0x40] ss:$8 sps:$4 sm:$0xff]  }
  0x2a   :  { %493 = vmatprep.subr.bf16.mxu0 %v626_v4  ;;  %v638_v12 = vld [vmem:[#allocation5 + $0x54] ss:$8 sps:$4 sm:$0xff]   ;;  %v640_v13 = vld [vmem:[#allocation5 + $0x50] ss:$8 sps:$4 sm:$0xff]   ;;  %v641_v14 = vld [vmem:[#allocation5 + $0x64] ss:$8 sps:$4 sm:$0xff]  }
  0x2b   :  { %v643_v15 = vld [vmem:[#allocation5 + $0x60] ss:$8 sps:$4 sm:$0xff]   ;;  %v644_v16 = vld [vmem:[#allocation5 + $0x74] ss:$8 sps:$4 sm:$0xff]   ;;  %v646_v17 = vld [vmem:[#allocation5 + $0x70] ss:$8 sps:$4 sm:$0xff]  }
  0x2c   :  { %v647_v18 = vld [vmem:[#allocation5 + $0x84] ss:$8 sps:$4 sm:$0xff]   ;;  %v649_v19 = vld [vmem:[#allocation5 + $0x80] ss:$8 sps:$4 sm:$0xff]   ;;  %v650_v20 = vld [vmem:[#allocation5 + $0x94] ss:$8 sps:$4 sm:$0xff]  }
  0x2d   :  { %494 = vmatpush1.bf16.msra.mxu0 %v628_v5  ;;  %v652_v21 = vld [vmem:[#allocation5 + $0x90] ss:$8 sps:$4 sm:$0xff]   ;;  %v653_v22 = vld [vmem:[#allocation5 + $0xa4] ss:$8 sps:$4 sm:$0xff]   ;;  %v655_v23 = vld [vmem:[#allocation5 + $0xa0] ss:$8 sps:$4 sm:$0xff]  }
  0x2e   :  { %495 = vmatprep.subr.bf16.mxu0 %v629_v6  ;;  %v656_v24 = vld [vmem:[#allocation5 + $0xb4] ss:$8 sps:$4 sm:$0xff]   ;;  %v658_v25 = vld [vmem:[#allocation5 + $0xb0] ss:$8 sps:$4 sm:$0xff]   ;;  %v659_v26 = vld [vmem:[#allocation5 + $0xc4] ss:$8 sps:$4 sm:$0xff]  }
  0x2f   :  { %v661_v27 = vld [vmem:[#allocation5 + $0xc0] ss:$8 sps:$4 sm:$0xff]   ;;  %v662_v28 = vld [vmem:[#allocation5 + $0xd4] ss:$8 sps:$4 sm:$0xff]   ;;  %v664_v29 = vld [vmem:[#allocation5 + $0xd0] ss:$8 sps:$4 sm:$0xff]  }
  0x30   :  { %v665_v30 = vld [vmem:[#allocation5 + $0xe4] ss:$8 sps:$4 sm:$0xff]   ;;  %v667_v31 = vld [vmem:[#allocation5 + $0xe0] ss:$8 sps:$4 sm:$0xff]   ;;  %v668_v32 = vld [vmem:[#allocation5 + $0xf4] ss:$8 sps:$4 sm:$0xff]  }
  0x31   :  { %496 = vmatpush1.bf16.msra.mxu0 %v631_v7  ;;  %v670_v33 = vld [vmem:[#allocation5 + $0xf0] ss:$8 sps:$4 sm:$0xff]   ;;  %v54_v35 = vshrl.u32 %v53_v34, 7  ;;  %v764_v5 = vmov 683565275   ;;  %s770_s0 = smov [#allocation7]  }
  0x32   :  { %497 = vmatprep.subr.bf16.mxu0 %v632_v8  ;;  %v41_v38 = vld [vmem:[#allocation2] ss:$8 sm:$0x3]  ;;  %v43_v39 = vld [vmem:[#allocation2 + $0x1] ss:$8 sm:$0x3] }
  0x33   :  { %v825_v36 = vsub.s32 0, %v54_v35  ;;  %v827_v37 = vsub.s32 1, %v54_v35  ;;  %s552_s2 = sshll.u32 %s770_s0, 4  ;;  %s553_s2 = int_to_ptr.vmem [resolvable:$true] %s552_s2 }
  0x34   :  { %s731_s12 = scalar_lea.vmem %s553_s2, 256  ;;  %p736_p3 = scmp.lt.s32.totalorder %s553_s2, %s553_s2 }
  0x35   :  { %498 = vmatpush1.bf16.msra.mxu0 %v634_v9  ;;  %v56_v40 = vrot.slane %v41_v38, %v825_v36  ;;  %v60_v41 = vrot.slane %v41_v38, %v827_v37  ;;  %v69_v42 = vrot.slane %v43_v39, %v825_v36  ;;  %v73_v43 = vrot.slane %v43_v39, %v827_v37  ;;  %p732_p2 = scmp.ne.s32.totalorder %s553_s2, %s731_s12  ;;  %p737_p4 = scmp.lt.s32.totalorder %s731_s12, %s731_s12 }
  0x36   :  { %499 = vmatprep.subr.bf16.mxu0 %v635_v10  ;;  %v765_v9 = vmov 2475754826  }
  0x37   :  { %p738_p5 = por %p737_p4, %p736_p3 }
  0x39   :  { %500 = vmatpush1.bf16.msra.mxu0 %v637_v11  ;;  %v766_v11 = vmov 2131351028   ;;  %p739_p6 = pnand %p738_p5, %p732_p2 }
  0x3a   :  { %501 = vmatprep.subr.bf16.mxu0 %v638_v12 }
  0x3d   :  { %502 = vmatpush1.bf16.msra.mxu0 %v640_v13  ;;  %v767_v13 = vmov 2102212464  }
  0x3e   :  { %503 = vmatprep.subr.bf16.mxu0 %v641_v14 }
  0x41   :  { %504 = vmatpush1.bf16.msra.mxu0 %v643_v15  ;;  %v768_v15 = vmov 920167782  }
  0x42   :  { %505 = vmatprep.subr.bf16.mxu0 %v644_v16 }
  0x45   :  { %506 = vmatpush1.bf16.msra.mxu0 %v646_v17 }
  0x46   :  { %507 = vmatprep.subr.bf16.mxu0 %v647_v18 }
  0x49   :  { %508 = vmatpush1.bf16.msra.mxu0 %v649_v19 }
  0x4a   :  { %509 = vmatprep.subr.bf16.mxu0 %v650_v20 }
  0x4d   :  { %510 = vmatpush1.bf16.msra.mxu0 %v652_v21 }
  0x4e   :  { %511 = vmatprep.subr.bf16.mxu0 %v653_v22  ;;  %v769_v22 = vmov 1326507024  }
  0x51   :  { %512 = vmatpush1.bf16.msra.mxu0 %v655_v23 }
  0x52   :  { %513 = vmatprep.subr.bf16.mxu0 %v656_v24 }
  0x55   :  { %514 = vmatpush1.bf16.msra.mxu0 %v658_v25 }
  0x56   :  { %515 = vmatprep.subr.bf16.mxu0 %v659_v26 }
  0x59   :  { %516 = vmatpush1.bf16.msra.mxu0 %v661_v27 }
  0x5a   :  { %517 = vmatprep.subr.bf16.mxu0 %v662_v28 }
  0x5d   :  { %518 = vmatpush1.bf16.msra.mxu0 %v664_v29 }
  0x5e   :  { %519 = vmatprep.subr.bf16.mxu0 %v665_v30 }
  0x61   :  { %520 = vmatpush1.bf16.msra.mxu0 %v667_v31 }
  0x62   :  { %521 = vmatprep.subr.bf16.mxu0 %v668_v32 }
  0x65   :  { %522 = vmatpush1.bf16.msra.mxu0 %v670_v33 }
  0xa7   :  { %v50_v44 = vpop.permute.xlu0 %49 }
  0xa8   :  { %v63_v45 = vmul.f32 %v56_v40, %v50_v44  ;;  %v64_v46 = vmul.f32 %v60_v41, %v50_v44 }
  0xaa   :  { %v833_v47 = vadd.f32 %v69_v42, %v63_v45  ;;  %v835_v48 = vadd.f32 %v73_v43, %v64_v46 }
  0xac   :  { %v78_v49 = vand.u32 2147483647, %v833_v47  ;;  %v81_v50 = vand.u32 2139095040, %v833_v47  ;;  %v185_v51 = vand.u32 2139095040, %v835_v48  ;;  %v182_v55 = vand.u32 2147483647, %v835_v48 }
  0xad   :  { %vm80_vm14 = vcmp.lt.s32.totalorder %v833_v47, 0 }
  0xae   :  { %v82_v52 = vshrl.u32 %v81_v50, 23  ;;  %v186_v53 = vshrl.u32 %v185_v51, 23  ;;  %v85_v54 = vand.u32 8388607, %v78_v49  ;;  %v845_v61 = vand.u32 8388607, %v182_v55 }
  0xaf   :  { %vm888_vm15 = vcmp.le.f32.partialorder %v78_v49, 0.7853982 }
  0xb0   :  { %v562_v56 = vadd.s32 4294967169, %v82_v52  ;;  %v566_v57 = vadd.s32 4294967169, %v186_v53  ;;  %v86_v60 = vor.u32 8388608, %v85_v54  ;;  %v190_v3 = vor.u32 8388608, %v845_v61 }
  0xb2   :  { %v88_v58 = vadd.s32 1, %v562_v56  ;;  %v192_v59 = vadd.s32 1, %v566_v57  ;;  %v847_v2 = vshll.u32 %v86_v60, 8 }
  0xb4   :  { %vm89_vm0 = vcmp.gt.s32.totalorder %v88_v58, 0  ;;  %vm193_vm1 = vcmp.gt.s32.totalorder %v192_v59, 0 }
  0xb5   :  { %v90_v62 = vsel %vm89_vm0, %v88_v58, 0  ;;  %v194_v63 = vsel %vm193_vm1, %v192_v59, 0  ;;  %vm184_vm0 = vcmp.lt.s32.totalorder %v835_v48, 0  ;;  %vm183_vm1 = vcmp.le.f32.partialorder %v182_v55, 0.7853982 }
  0xb6   :  { %v91_v0 = vshrl.u32 %v90_v62, 5  ;;  %v92_v1 = vand.u32 31, %v90_v62  ;;  %v850_v7 = vshrl.u32 %v194_v63, 5  ;;  %v196_v8 = vand.u32 31, %v194_v63 }
  0xb7   :  { %v230_v63 = vshll.u32 %v190_v3, 8 }
  0xb8   :  { %v93_v4 = vsub.s32 32, %v92_v1  ;;  %v95_v6 = vshll.u32 %v764_v5, %v92_v1  ;;  %v98_v10 = vshll.u32 %v765_v9, %v92_v1  ;;  %v101_v12 = vshll.u32 %v766_v11, %v92_v1 }
  0xb9   :  { %v104_v14 = vshll.u32 %v767_v13, %v92_v1  ;;  %v107_v16 = vshll.u32 %v768_v15, %v92_v1  ;;  %vm110_vm2 = vcmp.lt.s32.totalorder %v91_v0, 1  ;;  %vm111_vm3 = vcmp.lt.s32.totalorder %v91_v0, 2 }
  0xba   :  { %v96_v17 = vshrl.u32 %v765_v9, %v93_v4  ;;  %v99_v18 = vshrl.u32 %v766_v11, %v93_v4  ;;  %v102_v19 = vshrl.u32 %v767_v13, %v93_v4  ;;  %v94_v20 = vshrl.u32 %v764_v5, %v93_v4 }
  0xbb   :  { %v105_v21 = vshrl.u32 %v768_v15, %v93_v4  ;;  %v108_v23 = vshrl.u32 %v769_v22, %v93_v4  ;;  %v197_v27 = vsub.s32 32, %v196_v8  ;;  %vm112_vm4 = vcmp.lt.s32.totalorder %v91_v0, 3 }
  0xbc   :  { %v97_v24 = vor.u32 %v96_v17, %v95_v6  ;;  %v100_v25 = vor.u32 %v99_v18, %v98_v10  ;;  %v103_v26 = vor.u32 %v102_v19, %v101_v12  ;;  %vm113_vm5 = vcmp.lt.s32.totalorder %v91_v0, 4 }
  0xbd   :  { %v106_v28 = vor.u32 %v105_v21, %v104_v14  ;;  %v109_v29 = vor.u32 %v108_v23, %v107_v16  ;;  %v199_v39 = vshll.u32 %v764_v5, %v196_v8  ;;  %v200_v42 = vshrl.u32 %v765_v9, %v197_v27 }
  0xbe   :  { %v114_v30 = vsel %vm110_vm2, %v94_v20, %v97_v24  ;;  %v115_v31 = vsel %vm113_vm5, %v103_v26, 2102212464  ;;  %v118_v32 = vsel %vm110_vm2, %v97_v24, %v100_v25  ;;  %v122_v33 = vsel %vm110_vm2, %v100_v25, %v103_v26 }
  0xbf   :  { %v116_v34 = vsel %vm112_vm4, %v100_v25, %v115_v31  ;;  %v119_v35 = vsel %vm113_vm5, %v106_v28, 920167782  ;;  %v123_v38 = vsel %vm113_vm5, %v109_v29, 1326507024  ;;  %v202_v43 = vshll.u32 %v765_v9, %v196_v8 }
  0xc0   :  { %v120_v40 = vsel %vm112_vm4, %v103_v26, %v119_v35  ;;  %v124_v41 = vsel %vm112_vm4, %v106_v28, %v123_v38  ;;  %v117_v44 = vsel %vm111_vm3, %v114_v30, %v116_v34  ;;  %v203_v50 = vshrl.u32 %v766_v11, %v197_v27 }
  0xc1   :  { %v121_v45 = vsel %vm111_vm3, %v118_v32, %v120_v40  ;;  %v125_v46 = vsel %vm111_vm3, %v122_v33, %v124_v41  ;;  %v201_v56 = vor.u32 %v200_v42, %v199_v39  ;;  %v205_v58 = vshll.u32 %v766_v11, %v196_v8 }
  0xc2   :  { %v859_v51 = vmul.u32.u64.low %v847_v2, %v125_v46  ;;  %v860_v52 = vmul.u32.u64.high %v847_v2, %v125_v46, %v859_v51  ;;  %v863_v53 = vmul.u32.u64.low %v847_v2, %v121_v45  ;;  %v864_v54 = vmul.u32.u64.high %v847_v2, %v121_v45, %v863_v53 }
  0xc3   :  { %v204_v57 = vor.u32 %v203_v50, %v202_v43  ;;  %v206_v59 = vshrl.u32 %v767_v13, %v197_v27  ;;  %v208_v60 = vshll.u32 %v767_v13, %v196_v8  ;;  %v209_v61 = vshrl.u32 %v768_v15, %v197_v27 }
  0xc4   :  { %v212_v62 = vshrl.u32 %v769_v22, %v197_v27  ;;  %v133_v0 = vmul.u32 %v847_v2, %v117_v44  ;;  %v198_v1 = vshrl.u32 %v764_v5, %v197_v27  ;;  %v211_v6 = vshll.u32 %v768_v15, %v196_v8 }
  0xc5   :  { %v207_v4 = vor.u32 %v206_v59, %v205_v58  ;;  %vm135_vm6 = vc.u32 %v860_v52, %v863_v53  ;;  %v136_v9 = vadd.s32 1, %v864_v54  ;;  %v210_v10 = vor.u32 %v209_v61, %v208_v60 }
  0xc6   :  { %vm214_vm7 = vcmp.lt.s32.totalorder %v850_v7, 1  ;;  %v213_v12 = vor.u32 %v212_v62, %v211_v6  ;;  %vm216_vm8 = vcmp.lt.s32.totalorder %v850_v7, 3  ;;  %vm217_vm9 = vcmp.lt.s32.totalorder %v850_v7, 4 }
  0xc7   :  { %v222_v11 = vsel %vm214_vm7, %v201_v56, %v204_v57  ;;  %v137_v3 = vsel %vm135_vm6, %v136_v9, %v864_v54  ;;  %v219_v13 = vsel %vm217_vm9, %v207_v4, 2102212464  ;;  %v223_v2 = vsel %vm217_vm9, %v210_v10, 920167782 }
  0xc8   :  { %v226_v5 = vsel %vm214_vm7, %v204_v57, %v207_v4  ;;  %v138_v14 = vadd.s32 %v137_v3, %v133_v0  ;;  %vm215_vm10 = vcmp.lt.s32.totalorder %v850_v7, 2  ;;  %v224_v8 = vsel %vm216_vm8, %v207_v4, %v223_v2 }
  0xc9   :  { %v227_v15 = vsel %vm217_vm9, %v213_v12, 1326507024  ;;  %v218_v16 = vsel %vm214_vm7, %v198_v1, %v201_v56  ;;  %v220_v17 = vsel %vm216_vm8, %v204_v57, %v219_v13  ;;  %v225_v18 = vsel %vm215_vm10, %v222_v11, %v224_v8 }
  0xca   :  { %v228_v19 = vsel %vm216_vm8, %v210_v10, %v227_v15  ;;  %v139_v20 = vadd.s32 536870912, %v138_v14  ;;  %v874_v22 = vmul.u32.u64.low %v230_v63, %v225_v18  ;;  %v875_v23 = vmul.u32.u64.high %v230_v63, %v225_v18, %v874_v22 }
  0xcb   :  { %v229_v21 = vsel %vm215_vm10, %v226_v5, %v228_v19  ;;  %v221_v27 = vsel %vm215_vm10, %v218_v16, %v220_v17  ;;  %v134_v45 = vadd.s32 %v863_v53, %v860_v52  ;;  %vm170_vm6 = vweird.f32 %v833_v47 }
  0xcc   :  { %v877_v24 = vmul.u32.u64.low %v230_v63, %v229_v21  ;;  %v878_v25 = vmul.u32.u64.high %v230_v63, %v229_v21, %v877_v24  ;;  %v140_v26 = vshrl.u32 %v139_v20, 30  ;;  %v240_v29 = vadd.s32 1, %v875_v23 }
  0xcd   :  { %v237_v7 = vmul.u32 %v230_v63, %v221_v27  ;;  %vm274_vm9 = vweird.f32 %v835_v48 }
  0xce   :  { %v141_v28 = vshll.u32 %v140_v26, 30  ;;  %vm239_vm11 = vc.u32 %v878_v25, %v874_v22  ;;  %v238_v4 = vadd.s32 %v874_v22, %v878_v25  ;;  %v164_v2 = vsub.s32 4, %v140_v26 }
  0xcf   :  { %v241_v31 = vsel %vm239_vm11, %v240_v29, %v875_v23 }
  0xd0   :  { %v142_v30 = vsub.s32 %v138_v14, %v141_v28  ;;  %v242_v32 = vadd.s32 %v241_v31, %v237_v7  ;;  %v165_v18 = vsel %vm80_vm14, %v164_v2, %v140_v26 }
  0xd1   :  { %v167_v21 = vsel %vm888_vm15, 0, %v165_v18 }
  0xd2   :  { %v144_v33 = vsub.s32 0, %v142_v30  ;;  %v243_v34 = vadd.s32 536870912, %v242_v32  ;;  %v171_v24 = vadd.s32 3, %v167_v21 }
  0xd4   :  { %v563_v35 = vmin.u32 %v144_v33, %v142_v30  ;;  %v244_v38 = vshrl.u32 %v243_v34, 30  ;;  %v172_v29 = vand.u32 3, %v171_v24 }
  0xd6   :  { %v146_v39 = vclz %v563_v35  ;;  %v245_v40 = vshll.u32 %v244_v38, 30  ;;  %v268_v20 = vsub.s32 4, %v244_v38  ;;  %vm174_vm2 = vcmp.eq.s32.totalorder %v172_v29, 0 }
  0xd7   :  { %vm177_vm3 = vcmp.eq.s32.totalorder %v172_v29, 2  ;;  %vm173_vm4 = vcmp.lt.s32.totalorder %v172_v29, 2 }
  0xd8   :  { %v564_v41 = vadd.s32 4294967294, %v146_v39  ;;  %v246_v42 = vsub.s32 %v242_v32, %v245_v40  ;;  %v269_v23 = vsel %vm184_vm0, %v268_v20, %v244_v38 }
  0xd9   :  { %v271_v26 = vsel %vm183_vm1, 0, %v269_v23 }
  0xda   :  { %vm565_vm12 = vcmp.lt.s32.totalorder %v564_v41, 0  ;;  %v248_v44 = vsub.s32 0, %v246_v42  ;;  %v275_v31 = vadd.s32 3, %v271_v26 }
  0xdb   :  { %v149_v43 = vsel %vm565_vm12, 0, %v564_v41 }
  0xdc   :  { %v150_v46 = vsub.s32 32, %v149_v43  ;;  %v154_v50 = vsub.s32 4294967266, %v149_v43  ;;  %v567_v51 = vmin.u32 %v248_v44, %v246_v42  ;;  %v151_v54 = vshll.u32 %v142_v30, %v149_v43 }
  0xdd   :  { %v276_v34 = vand.u32 3, %v275_v31 }
  0xde   :  { %v152_v56 = vshrl.u32 %v134_v45, %v150_v46  ;;  %v155_v57 = vadd.s32 127, %v154_v50  ;;  %v250_v58 = vclz %v567_v51  ;;  %v45_v51 = vld [vmem:[#allocation2 + $0x2] ss:$8 sm:$0x3] }
  0xdf   :  { %vm281_vm5 = vcmp.eq.s32.totalorder %v276_v34, 2  ;;  %vm278_vm7 = vcmp.eq.s32.totalorder %v276_v34, 0  ;;  %vm277_vm8 = vcmp.lt.s32.totalorder %v276_v34, 2 }
  0xe0   :  { %v153_v59 = vor.u32 %v152_v56, %v151_v54  ;;  %v156_v60 = vshll.u32 %v155_v57, 23  ;;  %v568_v61 = vadd.s32 4294967294, %v250_v58  ;;  %v324_v54 = vrot.slane %v45_v51, %v825_v36 }
  0xe1   :  { %v328_v56 = vrot.slane %v45_v51, %v827_v37 }
  0xe2   :  { %v157_v62 = vor.u32 4788187, %v156_v60  ;;  %vm569_vm13 = vcmp.lt.s32.totalorder %v568_v61, 0  ;;  %v160_v0 = vcvt.s32.f32 %v153_v59 }
  0xe3   :  { %v253_v1 = vsel %vm569_vm13, 0, %v568_v61 }
  0xe4   :  { %v158_v63 = vand.u32 2147483647, %v157_v62  ;;  %v254_v6 = vsub.s32 32, %v253_v1  ;;  %v258_v9 = vsub.s32 4294967266, %v253_v1  ;;  %v255_v53 = vshll.u32 %v246_v42, %v253_v1 }
  0xe6   :  { %v161_v52 = vmul.f32 %v160_v0, %v158_v63  ;;  %v256_v10 = vshrl.u32 %v238_v4, %v254_v6  ;;  %v259_v12 = vadd.s32 127, %v258_v9 }
  0xe8   :  { %v162_v11 = vxor.u32 2147483648, %v161_v52  ;;  %v257_v3 = vor.u32 %v256_v10, %v255_v53  ;;  %v260_v13 = vshll.u32 %v259_v12, 23 }
  0xea   :  { %v163_v5 = vsel %vm80_vm14, %v162_v11, %v161_v52  ;;  %v261_v8 = vor.u32 4788187, %v260_v13  ;;  %v264_v17 = vcvt.s32.f32 %v257_v3 }
  0xeb   :  { %v166_v15 = vsel %vm888_vm15, %v833_v47, %v163_v5 }
  0xec   :  { %671 = vcosq.f32 %v166_v15  ;;  %v262_v16 = vand.u32 2147483647, %v261_v8 }
  0xed   :  { %673 = vsinq.f32 %v166_v15 }
  0xee   :  { %v265_v19 = vmul.f32 %v264_v17, %v262_v16 }
  0xf0   :  { %v266_v22 = vxor.u32 2147483648, %v265_v19 }
  0xf2   :  { %v267_v49 = vsel %vm184_vm0, %v266_v22, %v265_v19 }
  0xf3   :  { %v270_v25 = vsel %vm183_vm1, %v835_v48, %v267_v49 }
  0xf4   :  { %675 = vcosq.f32 %v270_v25 }
  0xf5   :  { %677 = vsinq.f32 %v270_v25 }
  0xf6   :  { %v672_v27 = vpop.eup %671 }
  0xf7   :  { %v674_v28 = vpop.eup %673  ;;  %v178_v30 = vxor.u32 2147483648, %v672_v27 }
  0xf8   :  { %v175_v7 = vxor.u32 2147483648, %v674_v28 }
  0xf9   :  { %v179_v33 = vsel %vm177_vm3, %v178_v30, %v674_v28 }
  0xfa   :  { %v176_v32 = vsel %vm174_vm2, %v672_v27, %v175_v7 }
  0xfb   :  { %v180_v35 = vsel %vm173_vm4, %v176_v32, %v179_v33 }
  0xfc   :  { %v181_v42 = vsel %vm170_vm6, nan, %v180_v35 }
  0xfd   :  { %v286_v46 = vpack.c.bf16 %v181_v42, %v181_v42 }
  0xfe   :  { %v676_v55 = vpop.eup %675 }
  0xff   :  { %v678_v38 = vpop.eup %677  ;;  %v282_v39 = vxor.u32 2147483648, %v676_v55 }
 0x100   :  { %v279_v40 = vxor.u32 2147483648, %v678_v38 }
 0x101   :  { %v283_v41 = vsel %vm281_vm5, %v282_v39, %v678_v38 }
 0x102   :  { %v280_v43 = vsel %vm278_vm7, %v676_v55, %v279_v40 }
 0x103   :  { %v284_v44 = vsel %vm277_vm8, %v280_v43, %v283_v41 }
 0x104   :  { %v285_v45 = vsel %vm274_vm9, nan, %v284_v44 }
 0x105   :  { %v287_v50 = vpack.c.bf16 %v285_v45, %v285_v45 }
 0x107   :  { %523 = vmatprep.mubr.bf16.mxu0 %v287_v50 }
 0x108   :  { %524 = vmatmul.mubr.bf16.vlgmr.msra.gmra.mrb[0].mxu0 %v286_v46 }
 0x1db   :  { %v525_v57 = vpop.f32.mrb[0].mxu0 }
 0x1dc   :  { %v526_v47 = vadd.f32 %v525_v57, %v324_v54  ;;  %v527_v58 = vpop.f32.mrb[1].mxu0 }
 0x1dd   :  { %v528_v59 = vadd.f32 %v527_v58, %v328_v56  ;;  %v529_v60 = vpop.f32.mrb[2].mxu0 }
 0x1de   :  { %v532_v61 = vsub.f32 0.0, %v526_v47  ;;  %v530_v62 = vpop.f32.mrb[3].mxu0 }
 0x1df   :  { %v533_v63 = vsub.f32 0.0, %v528_v59 }
 0x1e0   :  { %v534_v48 = vmul.f32 1.442695, %v532_v61 }
 0x1e1   :  { %v536_v0 = vmul.f32 1.442695, %v533_v63 }
 0x1e2   :  { %679 = vpow2.f32 %v534_v48 }
 0x1e3   :  { %681 = vpow2.f32 %v536_v0 }
 0x1ec   :  { %v680_v1 = vpop.eup %679 }
 0x1ed   :  { %v682_v4 = vpop.eup %681  ;;  %v538_v6 = vadd.f32 1.0, %v680_v1 }
 0x1ee   :  { %v539_v9 = vadd.f32 1.0, %v682_v4 }
 0x1ef   :  { %683 = vrcp.f32 %v538_v6 }
 0x1f0   :  { %685 = vrcp.f32 %v539_v9 }
 0x1f9   :  { %v684_v36 = vpop.eup %683 }
 0x1fa   :  { %v686_v37 = vpop.eup %685  ;;  %v542_v52 = vmul.f32 %v684_v36, %v526_v47 }
 0x1fb   :  { %v543_v53 = vmul.f32 %v686_v37, %v528_v59 }
 0x1fc   :  { %544 = vst [vmem:[#allocation7] sm:$0xff] %v542_v52 }
 0x1fd   :  { %545 = vst [vmem:[#allocation7 + $0x8] sm:$0xff] %v543_v53 }
 0x1fe   :  { %742 = shalt.err (!%p739_p6)
}
 0x1ff   :  { %s743_s15 = scalar_lea.hbm %s920_s3, 256 }
 0x200   :  { %p744_p7 = scmp.ne.s32.totalorder %s920_s3, %s743_s15  ;;  %p747_p8 = scmp.lt.u32.totalorder %s743_s15, %s920_s3 }
 0x202   :  { %p749_p9 = pnand %p747_p8, %p744_p7 }
 0x204   :  { %752 = shalt.err (!%p749_p9)
}
 0x205   :  { %555 = dma.vmem_to_hbm [thread:$0]  %s553_s2, 256, %s920_s3, [#allocation4]  }
 0x206   :  { %757 = dma.done.wait [#allocation4], 256  }
 0x207   :  { %758 = vsyncadd [#allocation4], 4294967040 }
 0x208   :  { %559 = vsyncpa [#allocation3], 1 }
 0x209   :  { %560 = vsyncpa [#allocation6], 1 }
 0x20a   :  { %561 = vsyncpa [#allocation4], 1 }

</bundles_post_ra>
